<compile_context>
chip_gen: v5e
topology: v5e:2x2
jax: 0.10.0
libtpu: 0.0.40
codegen_flags: <defaults>
</compile_context>

<pallas_src>
import jax
import jax.numpy as jnp
from jax.experimental import pallas as pl
from jax.experimental.pallas import tpu as pltpu


def _outconv_kernel(w_ref, b_ref, x_ref, o_ref):
    """One (n, row-tile) grid step.

    w_ref : SMEM (C_out, C_in) float32      -- scalar reads
    b_ref : SMEM (C_out,)      float32      -- scalar reads
    x_ref : VMEM (1, C_in,  TILE_R, 128)
    o_ref : VMEM (1, C_out, TILE_R, 128)
    """
    c_in = x_ref.shape[1]
    c_out = o_ref.shape[1]

    # Load and cast the whole input slab once per grid step (hoisted cast:
    # no per-channel redundant converts, important on v5e's f32-only VPU).
    x = x_ref[0].astype(jnp.float32)            # (C_in, TILE_R, 128)

    for co in range(c_out):                     # static, fully unrolled (tiny C_out)
        acc = x[0] * w_ref[co, 0] + b_ref[co]   # bias folded into first FMA
        for ci in range(1, c_in):               # static, fully unrolled (tiny C_in)
            acc = acc + x[ci] * w_ref[co, ci]
        # Direct per-channel store: full (TILE_R, 128) slab, unmasked vst.
        o_ref[0, co] = acc.astype(o_ref.dtype)


def _pick_tile_r(n_rows, c_in, in_itemsize, batch, sublane_mult):
    """Choose the row-tile (sublane extent) for (rows, 128) spatial blocks."""
    # ~2 MiB of input per block (per buffer): comfortably amortizes the
    # ~0.35 us per-grid-step overhead while staying far under VMEM limits.
    budget_bytes = 2 * 1024 * 1024
    rows_budget = max(sublane_mult, budget_bytes // (c_in * 128 * in_itemsize))
    rows_budget = (rows_budget // sublane_mult) * sublane_mult
    tile_r = min(n_rows, rows_budget)

    # Keep at least ~8 grid steps total (pipelining + v7x dual-TC) when the
    # image is big enough to split; never shrink below one (8,128) tile.
    min_steps = 8
    if batch * pl.cdiv(n_rows, tile_r) < min_steps and n_rows > sublane_mult:
        n_tiles_wanted = min(pl.cdiv(min_steps, batch),
                             pl.cdiv(n_rows, sublane_mult))
        tile_r = pl.cdiv(n_rows, n_tiles_wanted)
        tile_r = ((tile_r + sublane_mult - 1) // sublane_mult) * sublane_mult

    if tile_r >= n_rows:
        return n_rows                     # full-extent block: always legal
    # Sub-extent blocks must keep the sublane dim a multiple of 8 (16 for bf16).
    return max(sublane_mult, (tile_r // sublane_mult) * sublane_mult)


def outconv_forward(x_nchw, weight, bias):
    """1x1 conv forward (NCHW in, NCHW out).

    x_nchw : (N, C_in, H, W)
    weight : (C_out, C_in, 1, 1)   (PyTorch Conv2d weight layout)
    bias   : (C_out,)
    """
    N, C_in, H, W = x_nchw.shape
    C_out = weight.shape[0]
    HW = H * W

    in_itemsize = jnp.dtype(x_nchw.dtype).itemsize
    out_dtype = x_nchw.dtype
    out_itemsize = jnp.dtype(out_dtype).itemsize
    sublane_mult = 16 if in_itemsize <= 2 else 8

    # Flatten spatial, pad to a multiple of 128 lanes, view as (rows, 128).
    x3d = x_nchw.reshape(N, C_in, HW)
    hw_pad = pl.cdiv(HW, 128) * 128
    if hw_pad != HW:
        x3d = jnp.pad(x3d, ((0, 0), (0, 0), (0, hw_pad - HW)))
    R = hw_pad // 128
    x4d = x3d.reshape(N, C_in, R, 128)

    w2d = weight.reshape(C_out, C_in).astype(jnp.float32)
    b1d = bias.reshape(C_out).astype(jnp.float32)

    tile_r = _pick_tile_r(R, C_in, in_itemsize, N, sublane_mult)
    n_tiles = pl.cdiv(R, tile_r)
    grid = (N, n_tiles)

    # Explicit VMEM budget: double-buffered in/out blocks + 2x headroom,
    # capped well below v7x's 64 MiB physical VMEM.
    in_block_bytes = C_in * tile_r * 128 * in_itemsize
    out_block_bytes = C_out * tile_r * 128 * out_itemsize
    vmem_limit = min(48 << 20, max(16 << 20, 4 * (in_block_bytes + out_block_bytes)))

    cost = pl.CostEstimate(
        flops=2 * N * HW * C_in * C_out,
        transcendentals=0,
        bytes_accessed=N * HW * C_in * in_itemsize
        + N * HW * C_out * out_itemsize
        + (C_out * C_in + C_out) * 4,
    )

    out4d = pl.pallas_call(
        _outconv_kernel,
        out_shape=jax.ShapeDtypeStruct((N, C_out, R, 128), out_dtype),
        grid_spec=pltpu.PrefetchScalarGridSpec(
            num_scalar_prefetch=0,
            grid=grid,
            in_specs=[
                pl.BlockSpec(memory_space=pltpu.MemorySpace.SMEM),  # weight (C_out, C_in)
                pl.BlockSpec(memory_space=pltpu.MemorySpace.SMEM),  # bias   (C_out,)
                pl.BlockSpec((1, C_in, tile_r, 128), lambda n, j: (n, 0, j, 0)),
            ],
            out_specs=pl.BlockSpec((1, C_out, tile_r, 128), lambda n, j: (n, 0, j, 0)),
        ),
        compiler_params=pltpu.CompilerParams(
            dimension_semantics=("parallel", "parallel"),
            vmem_limit_bytes=vmem_limit,
            # NOTE: if xprof still shows exposed DMA on v7x, the x BlockSpec
            # can additionally use pipeline_mode=pl.Buffered(3) at tiny VMEM cost.
        ),
        cost_estimate=cost,
    )(w2d, b1d, x4d)

    out = out4d.reshape(N, C_out, hw_pad)
    if hw_pad != HW:
        out = out[:, :, :HW]
    return out.reshape(N, C_out, H, W)


if __name__ == "__main__":
    # Small shapes consistent with the module: batch=2, in_channels=4,
    # out_channels=3, spatial=16x16.
    N, C_in, C_out, H, W = 2, 4, 3, 16, 16

    key = jax.random.PRNGKey(0)
    kx, kw, kb = jax.random.split(key, 3)

    x = jax.random.normal(kx, (N, C_in, H, W), dtype=jnp.float32)
    # Deterministic synthetic parameters (PyTorch Conv2d shapes).
    weight = jax.random.normal(kw, (C_out, C_in, 1, 1), dtype=jnp.float32) * 0.1
    bias = jax.random.normal(kb, (C_out,), dtype=jnp.float32) * 0.1

    y = outconv_forward(x, weight, bias)
    y = jax.block_until_ready(y)

    # Sanity check vs plain-JAX reference (1x1 conv == channel contraction).
    ref = jnp.einsum("nchw,oc->nohw", x, weight.reshape(C_out, C_in)) + bias[
        None, :, None, None
    ]
    assert y.shape == (N, C_out, H, W)
    assert jnp.allclose(y, ref, atol=1e-5, rtol=1e-5)

    print("KERNEL_OK")
</pallas_src>

<mosaic_0001>
module attributes {stable_mosaic.version = 11 : i64} {
  func.func @_outconv_kernel(%arg0: i32, %arg1: i32, %arg2: memref<3x4xf32, #tpu.memory_space<smem>>, %arg3: memref<3xf32, #tpu.memory_space<smem>>, %arg4: memref<1x4x2x128xf32, #tpu.memory_space<vmem>>, %arg5: memref<1x3x2x128xf32, #tpu.memory_space<vmem>>) attributes {dimension_semantics = [#tpu.dimension_semantics<parallel>, #tpu.dimension_semantics<parallel>], iteration_bounds = array<i64: 2, 1>, scalar_prefetch = 0 : i64, scratch_operands = 0 : i64, tpu.core_type = #tpu.core_type<tc>, window_params = [{transform_indices = @transform_0, window_bounds = array<i64: 3, 4>}, {transform_indices = @transform_1, window_bounds = array<i64: 3>}, {transform_indices = @transform_2, window_bounds = array<i64: 1, 4, 2, 128>}, {transform_indices = @transform_3, window_bounds = array<i64: 1, 3, 2, 128>}]} {
    %c0 = arith.constant 0 : index
    %c0_0 = arith.constant 0 : index
    %c0_1 = arith.constant 0 : index
    %c0_2 = arith.constant 0 : index
    %0 = vector.load %arg4[%c0, %c0_0, %c0_1, %c0_2] : memref<1x4x2x128xf32, #tpu.memory_space<vmem>>, vector<1x4x2x128xf32>
    %1 = vector.shape_cast %0 : vector<1x4x2x128xf32> to vector<4x2x128xf32>
    %2 = vector.extract_strided_slice %1 {offsets = [0, 0, 0], sizes = [1, 2, 128], strides = [1, 1, 1]} : vector<4x2x128xf32> to vector<1x2x128xf32>
    %3 = vector.shape_cast %2 : vector<1x2x128xf32> to vector<2x128xf32>
    %c0_3 = arith.constant 0 : index
    %c0_4 = arith.constant 0 : index
    %4 = memref.load %arg2[%c0_3, %c0_4] : memref<3x4xf32, #tpu.memory_space<smem>>
    %5 = vector.broadcast %4 : f32 to vector<2x128xf32>
    %6 = arith.mulf %3, %5 : vector<2x128xf32>
    %c0_5 = arith.constant 0 : index
    %7 = memref.load %arg3[%c0_5] : memref<3xf32, #tpu.memory_space<smem>>
    %8 = vector.broadcast %7 : f32 to vector<2x128xf32>
    %9 = arith.addf %6, %8 : vector<2x128xf32>
    %10 = vector.extract_strided_slice %1 {offsets = [1, 0, 0], sizes = [1, 2, 128], strides = [1, 1, 1]} : vector<4x2x128xf32> to vector<1x2x128xf32>
    %11 = vector.shape_cast %10 : vector<1x2x128xf32> to vector<2x128xf32>
    %c0_6 = arith.constant 0 : index
    %c1 = arith.constant 1 : index
    %12 = memref.load %arg2[%c0_6, %c1] : memref<3x4xf32, #tpu.memory_space<smem>>
    %13 = vector.broadcast %12 : f32 to vector<2x128xf32>
    %14 = arith.mulf %11, %13 : vector<2x128xf32>
    %15 = arith.addf %9, %14 : vector<2x128xf32>
    %16 = vector.extract_strided_slice %1 {offsets = [2, 0, 0], sizes = [1, 2, 128], strides = [1, 1, 1]} : vector<4x2x128xf32> to vector<1x2x128xf32>
    %17 = vector.shape_cast %16 : vector<1x2x128xf32> to vector<2x128xf32>
    %c0_7 = arith.constant 0 : index
    %c2 = arith.constant 2 : index
    %18 = memref.load %arg2[%c0_7, %c2] : memref<3x4xf32, #tpu.memory_space<smem>>
    %19 = vector.broadcast %18 : f32 to vector<2x128xf32>
    %20 = arith.mulf %17, %19 : vector<2x128xf32>
    %21 = arith.addf %15, %20 : vector<2x128xf32>
    %22 = vector.extract_strided_slice %1 {offsets = [3, 0, 0], sizes = [1, 2, 128], strides = [1, 1, 1]} : vector<4x2x128xf32> to vector<1x2x128xf32>
    %23 = vector.shape_cast %22 : vector<1x2x128xf32> to vector<2x128xf32>
    %c0_8 = arith.constant 0 : index
    %c3 = arith.constant 3 : index
    %24 = memref.load %arg2[%c0_8, %c3] : memref<3x4xf32, #tpu.memory_space<smem>>
    %25 = vector.broadcast %24 : f32 to vector<2x128xf32>
    %26 = arith.mulf %23, %25 : vector<2x128xf32>
    %27 = arith.addf %21, %26 : vector<2x128xf32>
    %c0_9 = arith.constant 0 : index
    %c0_10 = arith.constant 0 : index
    %c0_11 = arith.constant 0 : index
    %c0_12 = arith.constant 0 : index
    %28 = vector.load %arg5[%c0_9, %c0_10, %c0_11, %c0_12] : memref<1x3x2x128xf32, #tpu.memory_space<vmem>>, vector<1x1x2x128xf32>
    %29 = vector.shape_cast %28 : vector<1x1x2x128xf32> to vector<2x128xf32>
    %30 = vector.shape_cast %27 : vector<2x128xf32> to vector<1x1x2x128xf32>
    tpu.vector_store %arg5[%c0_9, %c0_10, %c0_11, %c0_12], %30 {strides = array<i32>} : memref<1x3x2x128xf32, #tpu.memory_space<vmem>>, vector<1x1x2x128xf32>,
    %31 = vector.extract_strided_slice %1 {offsets = [0, 0, 0], sizes = [1, 2, 128], strides = [1, 1, 1]} : vector<4x2x128xf32> to vector<1x2x128xf32>
    %32 = vector.shape_cast %31 : vector<1x2x128xf32> to vector<2x128xf32>
    %c1_13 = arith.constant 1 : index
    %c0_14 = arith.constant 0 : index
    %33 = memref.load %arg2[%c1_13, %c0_14] : memref<3x4xf32, #tpu.memory_space<smem>>
    %34 = vector.broadcast %33 : f32 to vector<2x128xf32>
    %35 = arith.mulf %32, %34 : vector<2x128xf32>
    %c1_15 = arith.constant 1 : index
    %36 = memref.load %arg3[%c1_15] : memref<3xf32, #tpu.memory_space<smem>>
    %37 = vector.broadcast %36 : f32 to vector<2x128xf32>
    %38 = arith.addf %35, %37 : vector<2x128xf32>
    %39 = vector.extract_strided_slice %1 {offsets = [1, 0, 0], sizes = [1, 2, 128], strides = [1, 1, 1]} : vector<4x2x128xf32> to vector<1x2x128xf32>
    %40 = vector.shape_cast %39 : vector<1x2x128xf32> to vector<2x128xf32>
    %c1_16 = arith.constant 1 : index
    %c1_17 = arith.constant 1 : index
    %41 = memref.load %arg2[%c1_16, %c1_17] : memref<3x4xf32, #tpu.memory_space<smem>>
    %42 = vector.broadcast %41 : f32 to vector<2x128xf32>
    %43 = arith.mulf %40, %42 : vector<2x128xf32>
    %44 = arith.addf %38, %43 : vector<2x128xf32>
    %45 = vector.extract_strided_slice %1 {offsets = [2, 0, 0], sizes = [1, 2, 128], strides = [1, 1, 1]} : vector<4x2x128xf32> to vector<1x2x128xf32>
    %46 = vector.shape_cast %45 : vector<1x2x128xf32> to vector<2x128xf32>
    %c1_18 = arith.constant 1 : index
    %c2_19 = arith.constant 2 : index
    %47 = memref.load %arg2[%c1_18, %c2_19] : memref<3x4xf32, #tpu.memory_space<smem>>
    %48 = vector.broadcast %47 : f32 to vector<2x128xf32>
    %49 = arith.mulf %46, %48 : vector<2x128xf32>
    %50 = arith.addf %44, %49 : vector<2x128xf32>
    %51 = vector.extract_strided_slice %1 {offsets = [3, 0, 0], sizes = [1, 2, 128], strides = [1, 1, 1]} : vector<4x2x128xf32> to vector<1x2x128xf32>
    %52 = vector.shape_cast %51 : vector<1x2x128xf32> to vector<2x128xf32>
    %c1_20 = arith.constant 1 : index
    %c3_21 = arith.constant 3 : index
    %53 = memref.load %arg2[%c1_20, %c3_21] : memref<3x4xf32, #tpu.memory_space<smem>>
    %54 = vector.broadcast %53 : f32 to vector<2x128xf32>
    %55 = arith.mulf %52, %54 : vector<2x128xf32>
    %56 = arith.addf %50, %55 : vector<2x128xf32>
    %c0_22 = arith.constant 0 : index
    %c1_23 = arith.constant 1 : index
    %c0_24 = arith.constant 0 : index
    %c0_25 = arith.constant 0 : index
    %57 = vector.load %arg5[%c0_22, %c1_23, %c0_24, %c0_25] : memref<1x3x2x128xf32, #tpu.memory_space<vmem>>, vector<1x1x2x128xf32>
    %58 = vector.shape_cast %57 : vector<1x1x2x128xf32> to vector<2x128xf32>
    %59 = vector.shape_cast %56 : vector<2x128xf32> to vector<1x1x2x128xf32>
    tpu.vector_store %arg5[%c0_22, %c1_23, %c0_24, %c0_25], %59 {strides = array<i32>} : memref<1x3x2x128xf32, #tpu.memory_space<vmem>>, vector<1x1x2x128xf32>,
    %60 = vector.extract_strided_slice %1 {offsets = [0, 0, 0], sizes = [1, 2, 128], strides = [1, 1, 1]} : vector<4x2x128xf32> to vector<1x2x128xf32>
    %61 = vector.shape_cast %60 : vector<1x2x128xf32> to vector<2x128xf32>
    %c2_26 = arith.constant 2 : index
    %c0_27 = arith.constant 0 : index
    %62 = memref.load %arg2[%c2_26, %c0_27] : memref<3x4xf32, #tpu.memory_space<smem>>
    %63 = vector.broadcast %62 : f32 to vector<2x128xf32>
    %64 = arith.mulf %61, %63 : vector<2x128xf32>
    %c2_28 = arith.constant 2 : index
    %65 = memref.load %arg3[%c2_28] : memref<3xf32, #tpu.memory_space<smem>>
    %66 = vector.broadcast %65 : f32 to vector<2x128xf32>
    %67 = arith.addf %64, %66 : vector<2x128xf32>
    %68 = vector.extract_strided_slice %1 {offsets = [1, 0, 0], sizes = [1, 2, 128], strides = [1, 1, 1]} : vector<4x2x128xf32> to vector<1x2x128xf32>
    %69 = vector.shape_cast %68 : vector<1x2x128xf32> to vector<2x128xf32>
    %c2_29 = arith.constant 2 : index
    %c1_30 = arith.constant 1 : index
    %70 = memref.load %arg2[%c2_29, %c1_30] : memref<3x4xf32, #tpu.memory_space<smem>>
    %71 = vector.broadcast %70 : f32 to vector<2x128xf32>
    %72 = arith.mulf %69, %71 : vector<2x128xf32>
    %73 = arith.addf %67, %72 : vector<2x128xf32>
    %74 = vector.extract_strided_slice %1 {offsets = [2, 0, 0], sizes = [1, 2, 128], strides = [1, 1, 1]} : vector<4x2x128xf32> to vector<1x2x128xf32>
    %75 = vector.shape_cast %74 : vector<1x2x128xf32> to vector<2x128xf32>
    %c2_31 = arith.constant 2 : index
    %c2_32 = arith.constant 2 : index
    %76 = memref.load %arg2[%c2_31, %c2_32] : memref<3x4xf32, #tpu.memory_space<smem>>
    %77 = vector.broadcast %76 : f32 to vector<2x128xf32>
    %78 = arith.mulf %75, %77 : vector<2x128xf32>
    %79 = arith.addf %73, %78 : vector<2x128xf32>
    %80 = vector.extract_strided_slice %1 {offsets = [3, 0, 0], sizes = [1, 2, 128], strides = [1, 1, 1]} : vector<4x2x128xf32> to vector<1x2x128xf32>
    %81 = vector.shape_cast %80 : vector<1x2x128xf32> to vector<2x128xf32>
    %c2_33 = arith.constant 2 : index
    %c3_34 = arith.constant 3 : index
    %82 = memref.load %arg2[%c2_33, %c3_34] : memref<3x4xf32, #tpu.memory_space<smem>>
    %83 = vector.broadcast %82 : f32 to vector<2x128xf32>
    %84 = arith.mulf %81, %83 : vector<2x128xf32>
    %85 = arith.addf %79, %84 : vector<2x128xf32>
    %c0_35 = arith.constant 0 : index
    %c2_36 = arith.constant 2 : index
    %c0_37 = arith.constant 0 : index
    %c0_38 = arith.constant 0 : index
    %86 = vector.load %arg5[%c0_35, %c2_36, %c0_37, %c0_38] : memref<1x3x2x128xf32, #tpu.memory_space<vmem>>, vector<1x1x2x128xf32>
    %87 = vector.shape_cast %86 : vector<1x1x2x128xf32> to vector<2x128xf32>
    %88 = vector.shape_cast %85 : vector<2x128xf32> to vector<1x1x2x128xf32>
    tpu.vector_store %arg5[%c0_35, %c2_36, %c0_37, %c0_38], %88 {strides = array<i32>} : memref<1x3x2x128xf32, #tpu.memory_space<vmem>>, vector<1x1x2x128xf32>,
    return
  }
  func.func @transform_0(%arg0: i32, %arg1: i32) -> (i32, i32) {
    %c0_i32 = arith.constant 0 : i32
    %c0_i32_0 = arith.constant 0 : i32
    %c0_i32_1 = arith.constant 0 : i32
    return %c0_i32, %c0_i32_0 : i32, i32
  }
  func.func @transform_1(%arg0: i32, %arg1: i32) -> i32 {
    %c0_i32 = arith.constant 0 : i32
    %c0_i32_0 = arith.constant 0 : i32
    return %c0_i32 : i32
  }
  func.func @transform_2(%arg0: i32, %arg1: i32) -> (i32, i32, i32, i32) {
    %c0_i32 = arith.constant 0 : i32
    %c0_i32_0 = arith.constant 0 : i32
    %c0_i32_1 = arith.constant 0 : i32
    return %arg0, %c0_i32, %arg1, %c0_i32_0 : i32, i32, i32, i32
  }
  func.func @transform_3(%arg0: i32, %arg1: i32) -> (i32, i32, i32, i32) {
    %c0_i32 = arith.constant 0 : i32
    %c0_i32_0 = arith.constant 0 : i32
    %c0_i32_1 = arith.constant 0 : i32
    return %arg0, %c0_i32, %arg1, %c0_i32_0 : i32, i32, i32, i32
  }
}

</mosaic_0001>

<bundles_post_ra>
// kernel: tpu_custom_call.1
= control target key start
LH: loop header
LB: loop body
LE: loop exit
PB: predicated region body
PF: predicated region fallthrough
CT: control target
= control target key end

     0   :  { %s880_s0 = inlined_call_operand.hbm [shape: f32[3,4], index: 0, kind: input, shape index: {}]   ;;  %s881_s1 = inlined_call_operand.hbm [shape: f32[3], index: 1, kind: input, shape index: {}]   ;;  %s882_s2 = inlined_call_operand.hbm [shape: f32[2,4,2,128], index: 2, kind: input, shape index: {}]   ;;  %s883_s3 = inlined_call_operand.hbm [shape: f32[2,3,2,128], index: 3, kind: output, shape index: {}]  }
   0x1   :  { %884 = sst [smem:[#allocation14_spill]] %s880_s0 }
   0x2   :  { %8 = vsyncpa [#allocation5], 0 }
   0x3   :  { %9 = vsyncpa [#allocation7], 0 }
   0x4   :  { %10 = vsyncpa [#allocation3], 0 }
   0x5   :  { %12 = vsyncpa [#allocation3 + $0x1], 0 }
   0x6   :  { %13 = vsyncpa [#allocation4], 0 }
   0x7   :  { %15 = vsyncpa [#allocation4 + $0x1], 0  ;;  %s721_s12 = smov 0   ;;  %s723_s13 = smov 0  }
   0x8   :  { %s725_s14 = smov 0   ;;  %s727_s15 = smov 0  }
   0x9   :  { %s729_s16 = smov 0   ;;  %s731_s17 = smov 0  }
   0xa LB: > { %s422_s18 = sadd.s32 4294967295, %s693_s17   ;;  %s423_s19 = sadd.s32 4294967294, %s693_s17   ;;  %s693_s17 = sphi %s731_s17, %s21_s17   ;;  %s689_s16 = sphi %s729_s16, %s897_s16   ;;  %s685_s15 = sphi %s727_s15, %s896_s15   ;;  %s681_s14 = sphi %s725_s14, %s895_s14   ;;  %s677_s13 = sphi %s723_s13, %s894_s13   ;;  %s673_s12 = sphi %s721_s12, %s893_s12  }
   0xb   : > { %s84_s20 = sadd.s32 1, %s681_s14  ;;  %p91_p0 = scmp.ne.s32.totalorder %s681_s14, %s677_s13 }
   0xc   : > { %p92_p1 = scmp.eq.s32.totalorder %s693_s17, 0  ;;  %p97_p2 = scmp.ne.s32.totalorder %s677_s13, %s673_s12 }
   0xd   : > { %p759_p3 = scmp.eq.s32.totalorder %s422_s18, 0  ;;  %p123_p4 = scmp.eq.s32.totalorder %s422_s18, 1 }
   0xe   : > { %p763_p5 = por %p92_p1, %p91_p0  ;;  %p129_p6 = scmp.eq.s32.totalorder %s423_s19, 1 }
   0xf   : > { %p769_p7 = por %p759_p3, %p97_p2  ;;  %p773_p8 = por %p123_p4, %p91_p0 }
  0x10   : > { %p777_p9 = por %p129_p6, %p97_p2  ;;  %p424_p10 = scmp.ge.s32.totalorder %s693_s17, 1 }
  0x11   : > { %p136_p11 = scmp.lt.s32.totalorder %s693_s17, 3  ;;  %s890_s0 = sld [smem:[#allocation14_spill]] }
  0x12   : > { %p427_p13 = scmp.ge.s32.totalorder %s693_s17, 2  ;;  %p485_p0 = scmp.lt.s32.totalorder %s693_s17, 2 }
  0x13   : > { %p786_p12 = pnand %p424_p10, %p136_p11  ;;  %s158_s5 = sshll.u32 %s881_s1, 4  ;;  %s159_s5 = int_to_ptr.hbm [resolvable:$true] %s158_s5 }
  0x14   : > { %p799_p2 = pnand %p485_p0, %p763_p5  ;;  %s695_s7 = smov [#allocation2]  }
  0x15   : > { %p468_p1 = pneg %p786_p12  ;;  %s696_s8 = smov [#allocation6]  }
  0x16   : > { %s33_s9 = sadd.s32 1, %s689_s16  ;;  %s169_s10 = sand.u32 1, %s681_s14  }
  0x17   : > { %s148_s28 = sshll.u32 %s890_s0, 4  ;;  %p469_p4 = pnand %p468_p1, %p759_p3  ;;  %s149_s28 = int_to_ptr.hbm [resolvable:$true] %s148_s28 }
  0x18   : > { %p35_p6 = scmp.ge.s32.totalorder %s33_s9, 2  ;;  %s428_s11 = sshll.u32 %s169_s10, 3 }
  0x19   : > { %471 = dma.hbm_to_smem (!%p469_p4), %s149_s28, 64, %s695_s7, [#allocation5]  }
  0x1a   : > { %474 = dma.hbm_to_smem (!%p469_p4), %s159_s5, 16, %s696_s8, [#allocation7]  }
  0x1b   : > { %s453_s18 = sshll.u32 %s689_s16, 3  ;;  %s899_s9 = smov (%p35_p6, %s33_s9), 0 }
  0x1c   : > { %s179_s26 = scalar_lea.hbm %s882_s2, %s453_s18  ;;  %s79_s27 = ssub.s32 %s689_s16, %s899_s9 }
  0x1d   : > { %s180_s30 = sshll.u32 %s179_s26, 4  ;;  %p82_p5 = scmp.eq.s32.totalorder %s79_s27, 0  ;;  %s181_s30 = int_to_ptr.hbm [resolvable:$true] %s180_s30 }
  0x1e   : > { %s173_s28 = scalar_lea.vmem [#allocation8], %s428_s11  ;;  %s170_s7 = scalar_lea.sflag [#allocation3], %s169_s10 }
  0x1f   : > { %s182_s4 = sshll.u32 %s173_s28, 4  ;;  %s697_s8 = smov 32   ;;  %s183_s4 = int_to_ptr.vmem [resolvable:$true] %s182_s4 }
  0x20   : > { %s818_s5 = scalar_select %p82_p5, %s681_s14, %s84_s20  }
  0x21   : > { %s698_s0 = smov 2   ;;  %194 = sbr.rel (%p786_p12) target bundleno = 78 (0x4e), region = 32 }
  0x22   : > { %478 = dma.hbm_to_vmem [thread:$0]  (!%p799_p2), %s181_s30, 128, %s183_s4, %s170_s7, %s697_s8, %s697_s8, %s698_s0  }
  0x26   : > { %656 = dma.done.wait (%p759_p3), [#allocation5], 64  }
  0x27   : > { %658 = vsyncadd (%p759_p3), [#allocation5], 4294967232 }
  0x28   : > { %660 = dma.done.wait (%p759_p3), [#allocation7], 16  }
  0x29   : > { %662 = vsyncadd (%p759_p3), [#allocation7], 4294967280  ;;  %s833_s20 = sand.u32 1, %s677_s13  }
  0x2a   : > { %s434_s0 = sshll.u32 %s833_s20, 3  ;;  %s207_s29 = scalar_lea.sflag [#allocation3], %s833_s20 }
  0x2b   : > { %s210_s6 = scalar_lea.vmem [#allocation8], %s434_s0 }
  0x2c   : > { %664 = dma.done.wait (%p769_p7), %s207_s29, 128  }
  0x2d   : > { %666 = vsyncadd (%p769_p7), %s207_s29, 4294967168 }
  0x2e   : > { %216 = sfence }
  0x2f   : > { %s239_s10 = sld [smem:[#allocation2]]  ;;  %v235_v0 = vld [vmem:[%s210_s6] sm:$0x3]  ;;  %v236_v1 = vld [vmem:[%s210_s6 + $0x2] sm:$0x3]  ;;  %s454_s28 = smul.u32 6, %s833_s20 }
  0x30   : > { %s242_s11 = sld [smem:[#allocation6]]  ;;  %v237_v3 = vld [vmem:[%s210_s6 + $0x4] sm:$0x3]  ;;  %v238_v6 = vld [vmem:[%s210_s6 + $0x6] sm:$0x3]  ;;  %s455_s6 = smul.u32 6, %s685_s15 }
  0x31   : > { %s435_s18 = sld [smem:[#allocation2 + $0x1]] }
  0x32   : > { %s436_s21 = sld [smem:[#allocation2 + $0x2]] }
  0x33   : > { %s437_s19 = sld [smem:[#allocation2 + $0x3]] }
  0x34   : > { %s438_s22 = sld [smem:[#allocation2 + $0x80]] }
  0x35   : > { %v240_v2 = vstv %s239_s10  ;;  %s439_s26 = sld [smem:[#allocation6 + $0x1]]  ;;  %s234_s10 = scalar_lea.vmem [#allocation9], %s454_s28 }
  0x36   : > { %v241_v4 = vmul.f32 %v240_v2, %v235_v0  ;;  %v243_v5 = vstv %s242_s11  ;;  %s440_s27 = sld [smem:[#allocation2 + $0x81]]  ;;  %s312_s15 = sshll.u32 %s234_s10, 4  ;;  %s313_s15 = int_to_ptr.vmem [resolvable:$true] %s312_s15 }
  0x37   : > { %v246_v7 = vstv %s435_s18  ;;  %s441_s23 = sld [smem:[#allocation2 + $0x82]]  ;;  %s623_s28 = scalar_lea.hbm %s883_s3, 12 }
  0x38   : > { %v244_v8 = vadd.f32 %v243_v5, %v241_v4  ;;  %v247_v9 = vmul.f32 %v246_v7, %v236_v1  ;;  %v250_v10 = vstv %s436_s21  ;;  %s442_s30 = sld [smem:[#allocation2 + $0x83]]  ;;  %s311_s21 = scalar_lea.hbm %s883_s3, %s455_s6 }
  0x39   : > { %v251_v11 = vmul.f32 %v250_v10, %v237_v3  ;;  %v254_v12 = vstv %s437_s19  ;;  %s444_s4 = sld [smem:[#allocation2 + $0x100]]  ;;  %s314_s19 = sshll.u32 %s311_s21, 4  ;;  %s315_s19 = int_to_ptr.hbm [resolvable:$true] %s314_s19 }
  0x3a   : > { %v248_v13 = vadd.f32 %v247_v9, %v244_v8  ;;  %v255_v14 = vmul.f32 %v254_v12, %v238_v6  ;;  %v259_v15 = vstv %s438_s22  ;;  %s445_s7 = sld [smem:[#allocation6 + $0x2]]  ;;  %s299_s22 = scalar_lea.sflag [#allocation4], %s833_s20 }
  0x3b   : > { %v260_v16 = vmul.f32 %v259_v15, %v235_v0  ;;  %v262_v17 = vstv %s439_s26  ;;  %s446_s8 = sld [smem:[#allocation2 + $0x101]]  ;;  %s617_s26 = sshra.s32 %s315_s19, 4  ;;  %s618_s26 = int_to_ptr.hbm [resolvable:$true] %s617_s26 }
  0x3c   : > { %v252_v18 = vadd.f32 %v251_v11, %v248_v13  ;;  %v265_v19 = vstv %s440_s27  ;;  %s447_s0 = sld [smem:[#allocation2 + $0x102]]  ;;  %s619_s27 = scalar_lea.hbm %s618_s26, 6 }
  0x3d   : > { %v263_v20 = vadd.f32 %v262_v17, %v260_v16  ;;  %v266_v21 = vmul.f32 %v265_v19, %v236_v1  ;;  %v269_v22 = vstv %s441_s23  ;;  %s448_s29 = sld [smem:[#allocation2 + $0x103]]  ;;  %p620_p3 = scmp.ne.s32.totalorder %s618_s26, %s619_s27 }
  0x3e   : > { %v256_v23 = vadd.f32 %v255_v14, %v252_v18  ;;  %v270_v24 = vmul.f32 %v269_v22, %v237_v3  ;;  %v273_v25 = vstv %s442_s30  ;;  %p624_p11 = scmp.lt.s32.totalorder %s618_s26, %s883_s3  ;;  %p625_p12 = scmp.lt.s32.totalorder %s623_s28, %s619_s27 }
  0x3f   : > { %v267_v26 = vadd.f32 %v266_v21, %v263_v20  ;;  %v274_v27 = vmul.f32 %v273_v25, %v238_v6  ;;  %v279_v28 = vstv %s444_s4  ;;  %p621_p7 = pnand %p620_p3, %p773_p8 }
  0x40   : > { %257 = vst [vmem:[%s234_s10] sm:$0x3] %v256_v23  ;;  %v280_v29 = vmul.f32 %v279_v28, %v235_v0  ;;  %v282_v30 = vstv %s445_s7  ;;  %p626_p0 = por %p625_p12, %p624_p11 }
  0x41   : > { %v271_v31 = vadd.f32 %v270_v24, %v267_v26  ;;  %v285_v32 = vstv %s446_s8  ;;  %p622_p10 = pneg %p621_p7 }
  0x42   : > { %v283_v33 = vadd.f32 %v282_v30, %v280_v29  ;;  %v286_v34 = vmul.f32 %v285_v32, %v236_v1  ;;  %v289_v35 = vstv %s447_s0 }
  0x43   : > { %v275_v36 = vadd.f32 %v274_v27, %v271_v31  ;;  %v290_v37 = vmul.f32 %v289_v35, %v237_v3  ;;  %v293_v38 = vstv %s448_s29  ;;  %p627_p1 = pnand %p626_p0, %p622_p10 }
  0x44   : > { %v287_v39 = vadd.f32 %v286_v34, %v283_v33  ;;  %v294_v40 = vmul.f32 %v293_v38, %v238_v6 }
  0x45   : > { %443 = vst [vmem:[%s234_s10 + $0x2] sm:$0x3] %v275_v36 }
  0x46   : > { %v291_v41 = vadd.f32 %v290_v37, %v287_v39 }
  0x48   : > { %v295_v42 = vadd.f32 %v294_v40, %v291_v41 }
  0x4a   : > { %449 = vst [vmem:[%s234_s10 + $0x4] sm:$0x3] %v295_v42 }
  0x4b   : > { %630 = shalt.err (!%p627_p1)
}
  0x4c   : > { %s699_s20 = smov 32   ;;  %s700_s8 = smov 2  }
  0x4d   : > { %466 = dma.vmem_to_hbm [thread:$0]  (%p773_p8), %s313_s15, 96, %s315_s19, %s299_s22, %s699_s20, %s699_s20, %s700_s8  }
  0x4e PF: > { %s329_s0 = sand.u32 1, %s673_s12   ;;  %p480_p2 = pnand %p427_p13, %p777_p9 }
  0x4f   : > { %s330_s29 = scalar_lea.sflag [#allocation4], %s329_s0 }
  0x50   : > { %p481_p4 = pneg %p480_p2 }
  0x52   : > { %668 = dma.done.wait (%p481_p4), %s330_s29, 96  }
  0x53   : > { %670 = vsyncadd (%p481_p4), %s330_s29, 4294967200  ;;  %s21_s17 = sadd.s32 1, %s693_s17   ;;  %s893_s12 = smov %s677_s13 }
  0x54   : > { %p18_p6 = scmp.ge.s32.totalorder %s21_s17, 4   ;;  %s894_s13 = smov %s681_s14 }
  0x55   : > { %s895_s14 = smov %s818_s5  ;;  %s896_s15 = smov %s689_s16 }
  0x56   : > { %s897_s16 = smov %s899_s9  ;;  %20 = sbr.rel (!%p18_p6) target bundleno = 10 (0xa), region = 88 }
  0x5b   :  { %336 = vsyncpa [#allocation3], 1 }
  0x5c   :  { %338 = vsyncpa [#allocation3 + $0x1], 1 }
  0x5d   :  { %339 = vsyncpa [#allocation4], 1 }
  0x5e   :  { %341 = vsyncpa [#allocation4 + $0x1], 1 }
  0x5f   :  { %342 = vsyncpa [#allocation5], 1 }
  0x60   :  { %344 = vsyncpa [#allocation5 + $0x1], 1 }
  0x61   :  { %345 = vsyncpa [#allocation7], 1 }

</bundles_post_ra>
